<compile_context>
chip_gen: v7x
topology: tpu7x:2x2x1
jax: 0.10.0
libtpu: 0.0.40
codegen_flags: <defaults>
</compile_context>

<pallas_src>
import functools

import jax
import jax.numpy as jnp
from jax.experimental import pallas as pl
from jax.experimental.pallas import tpu as pltpu

EPS = 1e-5
_LANES = 128
_MiB = 1024 * 1024


def _vmem_capacity_bytes():
    """Best-effort VMEM capacity query; conservative fallback if unavailable."""
    try:
        info = pltpu.get_tpu_info()
        cap = getattr(info, "vmem_capacity_bytes", None)
        if cap:
            return int(cap)
    except Exception:
        pass
    return 64 * _MiB  # v7x-sized conservative default


# --------------------------------------------------------------------------
# Regime 1: small per-sample data -> batch many samples per grid step.
# Block is (block_n, D); per-sample reduction along the lane axis; per-sample
# dice written directly (no accumulators needed).
# --------------------------------------------------------------------------
def _batched_kernel(pred_ref, gt_ref, dice_ref, *, eps):
    p = pred_ref[...].astype(jnp.float32)   # (block_n, D); matches .float()
    g = gt_ref[...].astype(jnp.float32)
    tp = jnp.sum(g * p, axis=1, keepdims=True)     # (block_n, 1)
    spg = jnp.sum(g + p, axis=1, keepdims=True)    # sum(p)+sum(g) = 2tp+fp+fn
    dice_ref[...] = (2.0 * tp + eps) / (spg + eps)


# --------------------------------------------------------------------------
# Regime 2: large per-sample data -> (N, chunks) grid, lane-dense (rows,128)
# layout, f32 VMEM accumulators, sub-chunked in-kernel accumulation.
# --------------------------------------------------------------------------
def _fold8(x, sub_rows, acc_rows):
    """Fold (sub_rows,128) -> (acc_rows,128) with plain vreg adds (VPU only)."""
    if acc_rows == 8:
        return jnp.sum(x.reshape(sub_rows // 8, 8, _LANES), axis=0)
    return jnp.sum(x, axis=0, keepdims=True)


def _chunked_kernel(pred_ref, gt_ref, dice_ref, tp_acc, spg_acc, *,
                    block_rows, sub_rows, acc_rows, rows_total, eps):
    c = pl.program_id(1)
    nchunks = pl.num_programs(1)

    @pl.when(c == 0)
    def _init():
        tp_acc[...] = jnp.zeros_like(tp_acc)
        spg_acc[...] = jnp.zeros_like(spg_acc)

    n_sub_full = block_rows // sub_rows
    zero = jnp.zeros((acc_rows, _LANES), jnp.float32)

    def make_body(masked):
        def body(s, carry):
            tp_p, spg_p = carry
            r0 = s * sub_rows
            if not isinstance(s, int):
                r0 = pl.multiple_of(r0, sub_rows)
            # Loads pushed into the loop; sub-chunk intermediates stay small
            # (no block-wide f32 product materialized in VMEM).
            p = pred_ref[0, pl.ds(r0, sub_rows), :].astype(jnp.float32)
            g = gt_ref[0, pl.ds(r0, sub_rows), :].astype(jnp.float32)
            if masked:
                # Only traced/executed for the last (ragged) chunk: the block's
                # out-of-bounds rows are NOT zero-filled by Pallas, so they
                # must be masked out of the sums.
                rid = jax.lax.broadcasted_iota(jnp.int32, (sub_rows, _LANES), 0)
                rid = rid + (c * block_rows + r0)
                ok = rid < rows_total
                p = jnp.where(ok, p, 0.0)
                g = jnp.where(ok, g, 0.0)
            tp_p = tp_p + _fold8(g * p, sub_rows, acc_rows)
            spg_p = spg_p + _fold8(g + p, sub_rows, acc_rows)
            return tp_p, spg_p
        return body

    def accumulate_full():
        body = make_body(False)
        if n_sub_full <= 8:
            carry = (zero, zero)
            for s in range(n_sub_full):   # short static loop: unroll at trace
                carry = body(s, carry)
        else:
            carry = jax.lax.fori_loop(0, n_sub_full, body, (zero, zero))
        tp_acc[...] += carry[0]
        spg_acc[...] += carry[1]

    def accumulate_tail():
        body = make_body(True)
        rows_left = rows_total - c * block_rows
        n_sub = (rows_left + sub_rows - 1) // sub_rows   # skip fully-OOB subs
        carry = jax.lax.fori_loop(0, n_sub, body, (zero, zero))
        tp_acc[...] += carry[0]
        spg_acc[...] += carry[1]

    ragged = (rows_total % block_rows) != 0   # static
    if ragged:
        @pl.when(c < nchunks - 1)
        def _full():
            accumulate_full()

        @pl.when(c == nchunks - 1)
        def _tail():
            accumulate_tail()
    else:
        accumulate_full()

    @pl.when(c == nchunks - 1)
    def _finalize():
        # Single cross-lane (XLU) reduction per sample, deferred to the end.
        tp = jnp.sum(tp_acc[...])
        spg = jnp.sum(spg_acc[...])
        dice_ref[0, 0] = (2.0 * tp + eps) / (spg + eps)


# --------------------------------------------------------------------------
# Wrapper
# --------------------------------------------------------------------------
def soft_dice_loss(y_pr, y_gt, *, eps=EPS, max_block_bytes=None, sub_rows=256,
                   force_chunked=False):
    """1 - diceCoeff(y_pr, y_gt). Inputs NCHW (or any shape with leading N)."""
    N = y_pr.shape[0]
    assert y_gt.shape[0] == N
    pred = y_pr.reshape(N, -1)
    gt = y_gt.reshape(N, -1)
    D = pred.shape[1]

    # Narrow dtypes (bf16/f16/int/bool) stream as-is; the f32 cast happens
    # in-kernel so HBM traffic stays narrow.  >32-bit dtypes fold to f32 here
    # (torch's .float() does the same for pred).
    if pred.dtype.itemsize > 4:
        pred = pred.astype(jnp.float32)
    if gt.dtype.itemsize > 4:
        gt = gt.astype(jnp.float32)

    vmem_cap = _vmem_capacity_bytes()
    if max_block_bytes is None:
        # Combined (pred+gt) bytes streamed per grid step.  Double-buffered by
        # the pipeline, so 2x this must sit comfortably in VMEM:
        # v5e/v6e (128 MiB) -> 16 MiB/step, v7x (64 MiB) -> 8 MiB/step.
        max_block_bytes = min(16 * _MiB, vmem_cap // 8)

    per_sample_bytes = D * (pred.dtype.itemsize + gt.dtype.itemsize)

    # ---------------- Regime 1: batch samples per grid step ----------------
    # Cap the per-step block at 4 MiB combined here because this path computes
    # on the whole block (f32 temps ~2x block bytes) without sub-chunking.
    r1_step_bytes = min(max_block_bytes, 4 * _MiB)
    if (not force_chunked) and per_sample_bytes * 8 <= r1_step_bytes:
        n_fit = r1_step_bytes // per_sample_bytes     # >= 8 by the gate above
        if n_fit >= N:
            block_n = N                               # full array in N: 1 step
        else:
            block_n = (n_fit // 8) * 8                # multiple of 8 sublanes
        grid_n = pl.cdiv(N, block_n)

        block_bytes = block_n * per_sample_bytes
        need = 2 * block_bytes + 4 * block_n * D * 4 + block_n * 4
        vmem_limit = int(min(vmem_cap, max(16 * _MiB, need + 4 * _MiB)))

        cost = pl.CostEstimate(flops=4 * N * D, transcendentals=0,
                               bytes_accessed=N * per_sample_bytes + N * 4)

        dice = pl.pallas_call(
            functools.partial(_batched_kernel, eps=eps),
            out_shape=jax.ShapeDtypeStruct((N, 1), jnp.float32),
            grid_spec=pltpu.PrefetchScalarGridSpec(
                num_scalar_prefetch=0,
                grid=(grid_n,),
                in_specs=[
                    pl.BlockSpec((block_n, D), lambda i: (i, 0)),
                    pl.BlockSpec((block_n, D), lambda i: (i, 0)),
                ],
                out_specs=pl.BlockSpec((block_n, 1), lambda i: (i, 0)),
            ),
            compiler_params=pltpu.CompilerParams(
                dimension_semantics=("parallel",),
                vmem_limit_bytes=vmem_limit),
            cost_estimate=cost,
        )(pred, gt)
        return 1.0 - jnp.sum(dice[:, 0]) / N

    # -------------- Regime 2: chunked, lane-dense per-sample stream --------
    pad = (-D) % _LANES
    if pad:
        # TODO(synk): rare path (C*H*W is normally a multiple of 128); if it
        # matters in practice, mask the last lane group in-kernel instead of
        # paying this extra full read+write XLA pass.
        pred = jnp.pad(pred, ((0, 0), (0, pad)))
        gt = jnp.pad(gt, ((0, 0), (0, pad)))
    rows = (D + pad) // _LANES
    pred3 = pred.reshape(N, rows, _LANES)
    gt3 = gt.reshape(N, rows, _LANES)

    if rows >= 8:
        sub_rows = max(8, min((sub_rows // 8) * 8, (rows // 8) * 8))
        acc_rows = 8
    else:  # defensive; only reachable with force_chunked on tiny inputs
        sub_rows = rows
        acc_rows = 1

    bytes_per_row = _LANES * (pred3.dtype.itemsize + gt3.dtype.itemsize)
    budget_rows = max(sub_rows,
                      (max_block_bytes // bytes_per_row) // sub_rows * sub_rows)
    block_rows = max(sub_rows,
                     min(budget_rows, (rows // sub_rows) * sub_rows))
    chunks = pl.cdiv(rows, block_rows)

    need = (2 * block_rows * bytes_per_row            # double-buffered inputs
            + 8 * sub_rows * _LANES * 4               # sub-chunk temps
            + 2 * acc_rows * _LANES * 4)              # accumulators
    vmem_limit = int(min(vmem_cap, max(16 * _MiB, need + 4 * _MiB)))

    in_bytes = (pred3.size * pred3.dtype.itemsize
                + gt3.size * gt3.dtype.itemsize)
    cost = pl.CostEstimate(flops=4 * N * rows * _LANES, transcendentals=0,
                           bytes_accessed=in_bytes + N * 4)

    kernel = functools.partial(
        _chunked_kernel, block_rows=block_rows, sub_rows=sub_rows,
        acc_rows=acc_rows, rows_total=rows, eps=eps)

    dice = pl.pallas_call(
        kernel,
        out_shape=jax.ShapeDtypeStruct((N, 1), jnp.float32),
        grid_spec=pltpu.PrefetchScalarGridSpec(
            num_scalar_prefetch=0,
            grid=(N, chunks),
            in_specs=[
                pl.BlockSpec((1, block_rows, _LANES), lambda n, c: (n, c, 0)),
                pl.BlockSpec((1, block_rows, _LANES), lambda n, c: (n, c, 0)),
            ],
            out_specs=pl.BlockSpec((1, 1), lambda n, c: (n, 0),
                                   memory_space=pltpu.SMEM),
            scratch_shapes=[
                pltpu.VMEM((acc_rows, _LANES), jnp.float32),   # sum(g*p)
                pltpu.VMEM((acc_rows, _LANES), jnp.float32),   # sum(g+p)
            ],
        ),
        compiler_params=pltpu.CompilerParams(
            dimension_semantics=("parallel", "arbitrary"),
            vmem_limit_bytes=vmem_limit),
        cost_estimate=cost,
    )(pred3, gt3)

    return 1.0 - jnp.sum(dice[:, 0]) / N


def _soft_dice_loss_ref(y_pr, y_gt, eps=EPS):
    N = y_gt.shape[0]
    pred_flat = y_pr.reshape(N, -1).astype(jnp.float32)
    gt_flat = y_gt.reshape(N, -1).astype(jnp.float32)
    tp = jnp.sum(gt_flat * pred_flat, axis=1)
    fp = jnp.sum(pred_flat, axis=1) - tp
    fn = jnp.sum(gt_flat, axis=1) - tp
    dice = (2 * tp + eps) / (2 * tp + fp + fn + eps)
    return 1.0 - dice.sum() / N


if __name__ == "__main__":
    key = jax.random.PRNGKey(0)
    k1, k2 = jax.random.split(key)

    # y_pr: soft predictions in [0, 1]; y_gt: binary ground-truth mask.
    N, C, H, W = 2, 4, 16, 16
    y_pr = jax.random.uniform(k1, (N, C, H, W), dtype=jnp.float32)
    y_gt = (jax.random.uniform(k2, (N, C, H, W)) > 0.5).astype(jnp.float32)

    # Small-sample (batched) regime, f32.
    loss = jax.block_until_ready(soft_dice_loss(y_pr, y_gt))
    ref = _soft_dice_loss_ref(y_pr, y_gt)
    assert jnp.allclose(loss, ref, rtol=1e-5, atol=1e-5), (loss, ref)

    # bf16 inputs: HBM traffic halves; accumulation stays f32 in-kernel.
    y_pr_bf16 = y_pr.astype(jnp.bfloat16)
    y_gt_bf16 = y_gt.astype(jnp.bfloat16)
    loss_bf16 = jax.block_until_ready(soft_dice_loss(y_pr_bf16, y_gt_bf16))
    ref_bf16 = _soft_dice_loss_ref(y_pr_bf16, y_gt_bf16)
    assert jnp.allclose(loss_bf16, ref_bf16, rtol=1e-3, atol=1e-4), (
        loss_bf16, ref_bf16)

    # Exercise the chunked (large-sample) regime on a small input by forcing a
    # tiny per-step budget: multi-chunk accumulation + ragged row tail + mask.
    k3, k4 = jax.random.split(k1)
    y_pr2 = jax.random.uniform(k3, (2, 5, 32, 32), dtype=jnp.float32)
    y_gt2 = (jax.random.uniform(k4, (2, 5, 32, 32)) > 0.5).astype(jnp.float32)
    loss2 = jax.block_until_ready(
        soft_dice_loss(y_pr2, y_gt2, max_block_bytes=16 * 1024, sub_rows=16,
                       force_chunked=True))
    ref2 = _soft_dice_loss_ref(y_pr2, y_gt2)
    assert jnp.allclose(loss2, ref2, rtol=1e-4, atol=1e-5), (loss2, ref2)

    print("KERNEL_OK")
</pallas_src>

<mosaic_0001>
module attributes {stable_mosaic.version = 11 : i64} {
  func.func @_batched_kernel(%arg0: i32, %arg1: memref<2x1024xf32, #tpu.memory_space<vmem>>, %arg2: memref<2x1024xf32, #tpu.memory_space<vmem>>, %arg3: memref<2x1xf32, #tpu.memory_space<vmem>>) attributes {dimension_semantics = [#tpu.dimension_semantics<parallel>], iteration_bounds = array<i64: 1>, scalar_prefetch = 0 : i64, scratch_operands = 0 : i64, tpu.core_type = #tpu.core_type<tc>, window_params = [{transform_indices = @transform_0, window_bounds = array<i64: 2, 1024>}, {transform_indices = @transform_1, window_bounds = array<i64: 2, 1024>}, {transform_indices = @transform_2, window_bounds = array<i64: 2, 1>}]} {
    %c0 = arith.constant 0 : index
    %c0_0 = arith.constant 0 : index
    %0 = vector.load %arg1[%c0, %c0_0] : memref<2x1024xf32, #tpu.memory_space<vmem>>, vector<2x1024xf32>
    %c0_1 = arith.constant 0 : index
    %c0_2 = arith.constant 0 : index
    %1 = vector.load %arg2[%c0_1, %c0_2] : memref<2x1024xf32, #tpu.memory_space<vmem>>, vector<2x1024xf32>
    %2 = arith.mulf %1, %0 : vector<2x1024xf32>
    %cst = arith.constant dense<0.000000e+00> : vector<2xf32>
    %3 = vector.multi_reduction <add>, %2, %cst [1] : vector<2x1024xf32> to vector<2xf32>
    %4 = vector.shape_cast %3 : vector<2xf32> to vector<2x1xf32>
    %5 = arith.addf %1, %0 : vector<2x1024xf32>
    %cst_3 = arith.constant dense<0.000000e+00> : vector<2xf32>
    %6 = vector.multi_reduction <add>, %5, %cst_3 [1] : vector<2x1024xf32> to vector<2xf32>
    %7 = vector.shape_cast %6 : vector<2xf32> to vector<2x1xf32>
    %cst_4 = arith.constant 2.000000e+00 : f32
    %8 = vector.broadcast %cst_4 : f32 to vector<2x1xf32>
    %9 = arith.mulf %8, %4 : vector<2x1xf32>
    %cst_5 = arith.constant 9.99999974E-6 : f32
    %10 = vector.broadcast %cst_5 : f32 to vector<2x1xf32>
    %11 = arith.addf %9, %10 : vector<2x1xf32>
    %cst_6 = arith.constant 9.99999974E-6 : f32
    %12 = vector.broadcast %cst_6 : f32 to vector<2x1xf32>
    %13 = arith.addf %7, %12 : vector<2x1xf32>
    %14 = arith.divf %11, %13 : vector<2x1xf32>
    %c0_7 = arith.constant 0 : index
    %c0_8 = arith.constant 0 : index
    %15 = vector.load %arg3[%c0_7, %c0_8] : memref<2x1xf32, #tpu.memory_space<vmem>>, vector<2x1xf32>
    tpu.vector_store %arg3[%c0_7, %c0_8], %14 {strides = array<i32>} : memref<2x1xf32, #tpu.memory_space<vmem>>, vector<2x1xf32>,
    return
  }
  func.func @transform_0(%arg0: i32) -> (i32, i32) {
    %c0_i32 = arith.constant 0 : i32
    %c0_i32_0 = arith.constant 0 : i32
    return %arg0, %c0_i32 : i32, i32
  }
  func.func @transform_1(%arg0: i32) -> (i32, i32) {
    %c0_i32 = arith.constant 0 : i32
    %c0_i32_0 = arith.constant 0 : i32
    return %arg0, %c0_i32 : i32, i32
  }
  func.func @transform_2(%arg0: i32) -> (i32, i32) {
    %c0_i32 = arith.constant 0 : i32
    %c0_i32_0 = arith.constant 0 : i32
    return %arg0, %c0_i32 : i32, i32
  }
}

</mosaic_0001>

<bundles_post_ra>
// kernel: tpu_custom_call.1
= control target key start
LH: loop header
LB: loop body
LE: loop exit
PB: predicated region body
PF: predicated region fallthrough
CT: control target
= control target key end

     0   :  { %7 = vsyncpa [#allocation3], 0  ;;  %s293_s0 = inlined_call_operand.hbm [shape: f32[2,1024], index: 0, kind: input, shape index: {}]   ;;  %s294_s1 = inlined_call_operand.hbm [shape: f32[2,1024], index: 1, kind: input, shape index: {}]   ;;  %s295_s2 = inlined_call_operand.vmem [shape: f32[2,1], index: 2, kind: output, shape index: {}]  }
   0x1   :  { %8 = vsyncpa [#allocation5], 0  ;;  %s232_s9 = smov [#allocation2]   ;;  %s233_s11 = smov [#allocation4]  }
   0x2   :  { %s15_s10 = sshll.u32 %s232_s9, 4  ;;  %s25_s12 = sshll.u32 %s233_s11, 4  ;;  %s16_s10 = int_to_ptr.vmem [resolvable:$true] %s15_s10  ;;  %s26_s12 = int_to_ptr.vmem [resolvable:$true] %s25_s12 }
   0x3   :  { %s184_s15 = scalar_lea.hbm %s293_s0, 256 }
   0x4   :  { %p185_p0 = scmp.ne.s32.totalorder %s293_s0, %s184_s15  ;;  %p188_p1 = scmp.lt.u32.totalorder %s184_s15, %s293_s0 }
   0x6   :  { %p190_p2 = pnand %p188_p1, %p185_p0 }
   0x8   :  { %193 = shalt.err (!%p190_p2)
}
   0x9   :  { %s194_s20 = scalar_lea.vmem %s16_s10, 256  ;;  %p199_p4 = scmp.lt.s32.totalorder %s16_s10, %s16_s10 }
   0xa   :  { %p195_p3 = scmp.ne.s32.totalorder %s16_s10, %s194_s20  ;;  %p200_p5 = scmp.lt.s32.totalorder %s194_s20, %s194_s20 }
   0xc   :  { %p201_p6 = por %p200_p5, %p199_p4 }
   0xe   :  { %p202_p7 = pnand %p201_p6, %p195_p3 }
  0x10   :  { %205 = shalt.err (!%p202_p7)
}
  0x11   :  { %18 = dma.hbm_to_vmem [thread:$0]  %s293_s0, 256, %s16_s10, [#allocation3]  }
  0x12   :  { %s206_s25 = scalar_lea.hbm %s294_s1, 256 }
  0x13   :  { %p207_p8 = scmp.ne.s32.totalorder %s294_s1, %s206_s25  ;;  %p210_p9 = scmp.lt.u32.totalorder %s206_s25, %s294_s1 }
  0x15   :  { %p212_p10 = pnand %p210_p9, %p207_p8 }
  0x17   :  { %215 = shalt.err (!%p212_p10)
}
  0x18   :  { %s216_s30 = scalar_lea.vmem %s26_s12, 256  ;;  %p221_p12 = scmp.lt.s32.totalorder %s26_s12, %s26_s12 }
  0x19   :  { %p217_p11 = scmp.ne.s32.totalorder %s26_s12, %s216_s30  ;;  %p222_p13 = scmp.lt.s32.totalorder %s216_s30, %s216_s30 }
  0x1b   :  { %p223_p0 = por %p222_p13, %p221_p12 }
  0x1d   :  { %p224_p1 = pnand %p223_p0, %p217_p11 }
  0x1f   :  { %227 = shalt.err (!%p224_p1)
}
  0x20   :  { %28 = dma.hbm_to_vmem [thread:$0]  %s294_s1, 256, %s26_s12, [#allocation5]  }
  0x21   :  { %228 = dma.done.wait [#allocation3], 256  }
  0x22   :  { %229 = vsyncadd [#allocation3], 4294967040 }
  0x23   :  { %230 = dma.done.wait [#allocation5], 256  }
  0x24   :  { %231 = vsyncadd [#allocation5], 4294967040  ;;  %v47_v0 = vlaneseq  ;;  %v234_v1 = vmov 1983009808   ;;  %v35_v6 = vld [vmem:[#allocation2] sm:$0xff]  ;;  %v36_v7 = vld [vmem:[#allocation2 + $0x8] sm:$0xff] }
  0x25   :  { %v45_v2 = vunpack.c.l.s4 %v234_v1  ;;  %v37_v8 = vld [vmem:[#allocation4] sm:$0xff]  ;;  %v38_v9 = vld [vmem:[#allocation4 + $0x8] sm:$0xff]  ;;  %vm85_vm0 = vcmask 1041408   ;;  %vm171_vm1 = vcmask 1024  }
  0x26   :  { %v48_v3 = vshrl.u32 %v47_v0, 7  ;;  %v103_v10 = vadd.f32 %v37_v8, %v35_v6  ;;  %v39_v11 = vmul.f32 %v37_v8, %v35_v6  ;;  %v104_v12 = vadd.f32 %v38_v9, %v36_v7 }
  0x27   :  { %v46_v4 = vunpack.c.0.s8 %v45_v2  ;;  %v40_v19 = vmul.f32 %v38_v9, %v36_v7 }
  0x28   :  { %v107_v13 = vcombine.high %v103_v10, %v103_v10  ;;  %v43_v15 = vcombine.high %v39_v11, %v39_v11  ;;  %v124_v17 = vcombine.high %v104_v12, %v104_v12 }
  0x29   :  { %v49_v5 = vsub.s32 %v46_v4, %v48_v3  ;;  %v60_v30 = vcombine.high %v40_v19, %v40_v19 }
  0x2b   :  { %v114_v14 = vrot.slane %v103_v10, %v49_v5  ;;  %v50_v16 = vrot.slane %v39_v11, %v49_v5  ;;  %v131_v18 = vrot.slane %v104_v12, %v49_v5  ;;  %v121_v20 = vrot.slane %v107_v13, %v49_v5 }
  0x2c   :  { %v57_v23 = vrot.slane %v43_v15, %v49_v5  ;;  %v67_v31 = vrot.slane %v40_v19, %v49_v5  ;;  %v138_v32 = vrot.slane %v124_v17, %v49_v5  ;;  %v74_v42 = vrot.slane %v60_v30, %v49_v5 }
  0x2d   :  { %v122_v21 = vcombine.high %v114_v14, %v114_v14  ;;  %v149_v22 = vsel %vm85_vm0, %v114_v14, 0.0  ;;  %v58_v24 = vcombine.high %v50_v16, %v50_v16  ;;  %v123_v25 = vcombine.high %v121_v20, %v121_v20 }
  0x2e   :  { %v152_v27 = vsel %vm85_vm0, %v121_v20, 0.0  ;;  %v59_v29 = vcombine.high %v57_v23, %v57_v23  ;;  %v139_v33 = vcombine.high %v131_v18, %v131_v18  ;;  %v86_v35 = vsel %vm85_vm0, %v50_v16, 0.0 }
  0x2f   :  { %v150_v26 = vsel %vm85_vm0, %v122_v21, 0.0  ;;  %v154_v34 = vsel %vm85_vm0, %v123_v25, 0.0  ;;  %v87_v37 = vsel %vm85_vm0, %v58_v24, 0.0  ;;  %v89_v38 = vsel %vm85_vm0, %v57_v23, 0.0 }
  0x30   :  { %v151_v28 = vadd.f32 %v150_v26, %v149_v22  ;;  %v156_v39 = vsel %vm85_vm0, %v131_v18, 0.0  ;;  %v88_v40 = vadd.f32 %v87_v37, %v86_v35  ;;  %v75_v43 = vcombine.high %v67_v31, %v67_v31 }
  0x31   :  { %v91_v44 = vsel %vm85_vm0, %v59_v29, 0.0  ;;  %v140_v45 = vcombine.high %v138_v32, %v138_v32  ;;  %v158_v46 = vsel %vm85_vm0, %v139_v33, 0.0  ;;  %v93_v49 = vsel %vm85_vm0, %v67_v31, 0.0 }
  0x32   :  { %v153_v36 = vadd.f32 %v152_v27, %v151_v28  ;;  %v90_v47 = vadd.f32 %v89_v38, %v88_v40  ;;  %v160_v50 = vsel %vm85_vm0, %v138_v32, 0.0  ;;  %v76_v53 = vcombine.high %v74_v42, %v74_v42 }
  0x33   :  { %v95_v54 = vsel %vm85_vm0, %v75_v43, 0.0  ;;  %v162_v55 = vsel %vm85_vm0, %v140_v45, 0.0  ;;  %v97_v58 = vsel %vm85_vm0, %v74_v42, 0.0 }
  0x34   :  { %v155_v41 = vadd.f32 %v154_v34, %v153_v36  ;;  %v92_v51 = vadd.f32 %v91_v44, %v90_v47  ;;  %v99_v61 = vsel %vm85_vm0, %v76_v53, 0.0 }
  0x36   :  { %v157_v48 = vadd.f32 %v156_v39, %v155_v41  ;;  %v94_v56 = vadd.f32 %v93_v49, %v92_v51 }
  0x38   :  { %v159_v52 = vadd.f32 %v158_v46, %v157_v48  ;;  %v96_v59 = vadd.f32 %v95_v54, %v94_v56 }
  0x3a   :  { %v161_v57 = vadd.f32 %v160_v50, %v159_v52  ;;  %v98_v62 = vadd.f32 %v97_v58, %v96_v59 }
  0x3c   :  { %v163_v60 = vadd.f32 %v162_v55, %v161_v57  ;;  %v100_v63 = vadd.f32 %v99_v61, %v98_v62 }
  0x3e   :  { %164 = vadd.xlane.f32.xlu0 %v163_v60 }
  0x42   :  { %101 = vadd.xlane.f32.xlu0 %v100_v63 }
  0xcb   :  { %v165_v0 = vpop.xlane.xlu0 %164 }
  0xcc   :  { %v168_v1 = vadd.f32 1e-05, %v165_v0 }
  0xce   :  { %182 = vrcp.f32 %v168_v1 }
  0xcf   :  { %v102_v2 = vpop.xlane.xlu0 %101 }
  0xd0   :  { %v166_v3 = vmul.f32 2.0, %v102_v2 }
  0xd2   :  { %v167_v4 = vadd.f32 1e-05, %v166_v3 }
  0xd8   :  { %v183_v5 = vpop.eup %182 }
  0xd9   :  { %v170_v6 = vmul.f32 %v183_v5, %v167_v4 }
  0xdb   :  { %172 = vst.msk [vmem:[%s295_s2] sm:$0x3] %vm171_vm1, %v170_v6 }
  0xdc   :  { %177 = vsyncpa [#allocation3], 1 }
  0xdd   :  { %178 = vsyncpa [#allocation5], 1 }

</bundles_post_ra>
